<compile_context>
chip_gen: v6e
topology: v6e:2x2x1
jax: 0.10.0
libtpu: 0.0.40
codegen_flags: <defaults>
</compile_context>

<pallas_src>
import jax
import jax.numpy as jnp
from jax.experimental import pallas as pl
from jax.experimental.pallas import tpu as pltpu

_VMEM = pl.BlockSpec(memory_space=pltpu.MemorySpace.VMEM)

LANE = 128  # feature dims padded to a multiple of this
SUB = 8     # node counts padded to a multiple of this

# Synthetic heterogeneous graph schema (srctype, relation, dsttype)
RELS = (
    ("user", "follows", "user"),
    ("item", "clicked-by", "user"),
    ("user", "clicks", "item"),
)
NTYPES = ("user", "item")


# ---------------- Fused Pallas kernel (entire forward pass) ----------------

def _fused_forward_kernel(a_uu_ref, a_ui_ref, a_iu_ref,        # bf16 normalized adjacencies (padded)
                          xu_ref, xi_ref,                      # bf16 padded node features
                          w1u_ref, b1u_ref, w1i_ref, b1i_ref,  # layer-1 stacked weights (bf16 W, f32 b)
                          mu_uu_ref, mu_ui_ref, mi_iu_ref,     # f32 mean-row readout vectors (1, N*)
                          w2c_ref, bf_ref,                     # f32 folded layer2@classifier, fused bias
                          o_ref):
    f32 = jnp.float32
    bf16 = jnp.bfloat16

    # ---- RGCN layer 1 (bias + cross-relation sum + ReLU fused; bf16 MXU, f32 accum) ----
    # dst = user: batch the two incoming relations into one wide (K = 2P) matmul.
    zu = jnp.concatenate(
        [jnp.dot(a_uu_ref[...], xu_ref[...], preferred_element_type=f32),
         jnp.dot(a_ui_ref[...], xi_ref[...], preferred_element_type=f32)], axis=1)   # (Nu, 2P)
    h1u = jnp.maximum(
        jnp.dot(zu.astype(bf16), w1u_ref[...], preferred_element_type=f32)
        + b1u_ref[...], 0.0)                                                          # (Nu, H)
    # dst = item: single incoming relation.
    zi = jnp.dot(a_iu_ref[...], xu_ref[...], preferred_element_type=f32)              # (Ni, P)
    h1i = jnp.maximum(
        jnp.dot(zi.astype(bf16), w1i_ref[...], preferred_element_type=f32)
        + b1i_ref[...], 0.0)                                                          # (Ni, H)

    # ---- layer 2 + mean readout + classifier, all folded ----
    # mean-row vectors already carry 1/true_node_count and zeros on padded node columns,
    # so padded h1 rows (= relu(bias)) contribute nothing.
    r = jnp.concatenate(
        [jnp.dot(mu_uu_ref[...], h1u, preferred_element_type=f32),    # 'follows'    -> user
         jnp.dot(mu_ui_ref[...], h1i, preferred_element_type=f32),    # 'clicked-by' -> user
         jnp.dot(mi_iu_ref[...], h1u, preferred_element_type=f32)],   # 'clicks'     -> item
        axis=1)                                                                       # (1, 3H)
    o_ref[...] = jnp.dot(r, w2c_ref[...], preferred_element_type=f32) + bf_ref[...]   # (1, C)


# ---------------- Wrapper: padding / weight folding (done once, outside hot path) --------------

def _ceil(n, m):
    return ((n + m - 1) // m) * m


def _pad2(x, rows, cols, dtype=None):
    y = jnp.pad(x, ((0, rows - x.shape[0]), (0, cols - x.shape[1])))
    return y.astype(dtype) if dtype is not None else y


def normalize_adj(a):
    # DGL GraphConv norm='both': A_hat = D_in^{-1/2} A D_out^{-1/2}, degrees clamped to >= 1
    in_deg = jnp.clip(a.sum(axis=1), 1.0, None)
    out_deg = jnp.clip(a.sum(axis=0), 1.0, None)
    return (in_deg ** -0.5)[:, None] * a * (out_deg ** -0.5)[None, :]


def prepare_operands(feats, adj_hat, params, in_dim, hidden_dim, n_classes):
    """Pad node rows to 8 sublanes / feature dims to 128 lanes, cast the heavy operands to bf16,
    stack per-relation layer-1 weights, and algebraically fold layer-2 + mean + classifier."""
    f32, bf16 = jnp.float32, jnp.bfloat16
    n_user, n_item = feats["user"].shape[0], feats["item"].shape[0]
    Nu, Ni = _ceil(n_user, SUB), _ceil(n_item, SUB)
    P, H, C = _ceil(in_dim, LANE), _ceil(hidden_dim, LANE), _ceil(n_classes, LANE)

    # padded node features (zero rows / zero lanes), bf16
    xu = _pad2(feats["user"], Nu, P, bf16)
    xi = _pad2(feats["item"], Ni, P, bf16)

    # padded normalized adjacencies A[dst, src], bf16
    a_uu = _pad2(adj_hat["follows"],    Nu, Nu, bf16)
    a_ui = _pad2(adj_hat["clicked-by"], Nu, Ni, bf16)
    a_iu = _pad2(adj_hat["clicks"],     Ni, Nu, bf16)

    w1, b1, w2, b2 = params["w1"], params["b1"], params["w2"], params["b2"]

    # layer 1, dst = user: concat([A_f@Xu, A_c@Xi], lanes) @ vstack([W_f, W_c]) == sum of relations
    w1u = jnp.concatenate([_pad2(w1["follows"], P, H),
                           _pad2(w1["clicked-by"], P, H)], axis=0).astype(bf16)     # (2P, H)
    b1u = _pad2(b1["follows"] + b1["clicked-by"], 1, H).astype(f32)                 # summed biases
    w1i = _pad2(w1["clicks"], P, H).astype(bf16)
    b1i = _pad2(b1["clicks"], 1, H).astype(f32)

    # mean readout commuted through (linear) layer 2: (1^T A / true_count), padded cols are zero
    mu_uu = _pad2(adj_hat["follows"].sum(axis=0, keepdims=True) / n_user, 1, Nu, f32)
    mu_ui = _pad2(adj_hat["clicked-by"].sum(axis=0, keepdims=True) / n_user, 1, Ni, f32)
    mi_iu = _pad2(adj_hat["clicks"].sum(axis=0, keepdims=True) / n_item, 1, Nu, f32)

    # layer 2 weights folded into the classifier: W2c = vstack(W2_rel) @ Wc, bias fully fused
    wc = _pad2(params["wc"], H, C).astype(f32)
    w2c = jnp.concatenate([_pad2(w2["follows"], H, H),
                           _pad2(w2["clicked-by"], H, H),
                           _pad2(w2["clicks"], H, H)], axis=0).astype(f32) @ wc     # (3H, C)
    bfused = (_pad2(b2["follows"] + b2["clicked-by"] + b2["clicks"], 1, H).astype(f32) @ wc
              + _pad2(params["bc"], 1, C).astype(f32))                              # (1, C)

    operands = (a_uu, a_ui, a_iu, xu, xi,
                w1u, b1u, w1i, b1i,
                mu_uu, mu_ui, mi_iu,
                w2c, bfused)
    return operands, C


def hetero_classifier_forward(operands, c_pad, n_classes):
    (a_uu, a_ui, a_iu, xu, xi, w1u, _, w1i, _, _, _, _, w2c, _) = operands
    Nu, Ni = a_uu.shape[0], a_iu.shape[0]
    P, H = xu.shape[1], w1i.shape[1]

    op_bytes = sum(int(o.size) * o.dtype.itemsize for o in operands)
    flops = 2 * (Nu * Nu * P + Nu * Ni * P + Ni * Nu * P        # A @ X
                 + Nu * (2 * P) * H + Ni * P * H                # @ W1 (stacked)
                 + 2 * Nu * H + Ni * H                          # readout GEMVs
                 + 3 * H * c_pad)                               # folded classifier
    cost = pl.CostEstimate(flops=flops, transcendentals=0,
                           bytes_accessed=op_bytes + 4 * c_pad)
    vmem_limit = int(min(max(2 * op_bytes + (4 << 20), 32 << 20), 64 << 20))

    logits_pad = pl.pallas_call(
        _fused_forward_kernel,
        out_shape=jax.ShapeDtypeStruct((1, c_pad), jnp.float32),
        in_specs=[_VMEM] * len(operands),
        out_specs=_VMEM,
        compiler_params=pltpu.CompilerParams(vmem_limit_bytes=vmem_limit),
        cost_estimate=cost,
    )(*operands)
    return logits_pad[:, :n_classes]


# ---------------- Pure-JAX reference (f32, for verification) ----------------

def ref_forward(feats, adj_hat, params):
    def layer(h, ws, bs):
        out = {}
        for (src, rel, dst) in RELS:
            y = adj_hat[rel] @ h[src] @ ws[rel] + bs[rel]
            out[dst] = y if dst not in out else out[dst] + y
        return out

    h = layer(feats, params["w1"], params["b1"])
    h = {k: jnp.maximum(v, 0.0) for k, v in h.items()}
    h = layer(h, params["w2"], params["b2"])
    hg = (jnp.mean(h["user"], axis=0, keepdims=True)
          + jnp.mean(h["item"], axis=0, keepdims=True))
    return hg @ params["wc"] + params["bc"]


# ---------------- Main ----------------

if __name__ == "__main__":
    key = jax.random.PRNGKey(0)
    in_dim, hidden_dim, n_classes = 16, 32, 5
    n_user, n_item = 12, 10

    keys = jax.random.split(key, 11)

    # Node features per node type (g.ndata['feat'])
    feats = {
        "user": jax.random.normal(keys[0], (n_user, in_dim), jnp.float32),
        "item": jax.random.normal(keys[1], (n_item, in_dim), jnp.float32),
    }

    # Dense adjacency per relation, A[dst, src]
    adj = {
        "follows": jax.random.bernoulli(keys[2], 0.3, (n_user, n_user)).astype(jnp.float32),
        "clicked-by": jax.random.bernoulli(keys[3], 0.3, (n_user, n_item)).astype(jnp.float32),
        "clicks": jax.random.bernoulli(keys[4], 0.3, (n_item, n_user)).astype(jnp.float32),
    }
    adj_hat = {k: normalize_adj(v) for k, v in adj.items()}

    def winit(k, shape, scale=0.1):
        return scale * jax.random.normal(k, shape, jnp.float32)

    rel_names = [r for (_, r, _) in RELS]
    params = {
        "w1": {r: winit(jax.random.fold_in(keys[5], i), (in_dim, hidden_dim))
               for i, r in enumerate(rel_names)},
        "b1": {r: winit(jax.random.fold_in(keys[6], i), (1, hidden_dim))
               for i, r in enumerate(rel_names)},
        "w2": {r: winit(jax.random.fold_in(keys[7], i), (hidden_dim, hidden_dim))
               for i, r in enumerate(rel_names)},
        "b2": {r: winit(jax.random.fold_in(keys[8], i), (1, hidden_dim))
               for i, r in enumerate(rel_names)},
        "wc": winit(keys[9], (hidden_dim, n_classes)),
        "bc": winit(keys[10], (1, n_classes)),
    }

    # One-time operand preparation (padding + bf16 cast + layer-2/classifier folding).
    operands, c_pad = prepare_operands(feats, adj_hat, params, in_dim, hidden_dim, n_classes)
    operands = jax.block_until_ready(operands)

    logits = jax.block_until_ready(hetero_classifier_forward(operands, c_pad, n_classes))
    ref = ref_forward(feats, adj_hat, params)

    assert logits.shape == (1, n_classes)
    # bf16 storage of A / X / W1 (f32 accumulation) -> looser tolerance than a pure-f32 check.
    assert jnp.allclose(logits, ref, atol=2e-2, rtol=2e-2), (logits, ref)
    print("KERNEL_OK")
</pallas_src>

<mosaic_0001>
module attributes {stable_mosaic.version = 11 : i64} {
  func.func @_fused_forward_kernel(%arg0: memref<16x16xbf16, #tpu.memory_space<vmem>>, %arg1: memref<16x16xbf16, #tpu.memory_space<vmem>>, %arg2: memref<16x16xbf16, #tpu.memory_space<vmem>>, %arg3: memref<16x128xbf16, #tpu.memory_space<vmem>>, %arg4: memref<16x128xbf16, #tpu.memory_space<vmem>>, %arg5: memref<256x128xbf16, #tpu.memory_space<vmem>>, %arg6: memref<1x128xf32, #tpu.memory_space<vmem>>, %arg7: memref<128x128xbf16, #tpu.memory_space<vmem>>, %arg8: memref<1x128xf32, #tpu.memory_space<vmem>>, %arg9: memref<1x16xf32, #tpu.memory_space<vmem>>, %arg10: memref<1x16xf32, #tpu.memory_space<vmem>>, %arg11: memref<1x16xf32, #tpu.memory_space<vmem>>, %arg12: memref<384x128xf32, #tpu.memory_space<vmem>>, %arg13: memref<1x128xf32, #tpu.memory_space<vmem>>, %arg14: memref<1x128xf32, #tpu.memory_space<vmem>>) attributes {dimension_semantics = [], scalar_prefetch = 0 : i64, scratch_operands = 0 : i64, tpu.core_type = #tpu.core_type<tc>} {
    %c0 = arith.constant 0 : index
    %c0_0 = arith.constant 0 : index
    %0 = vector.load %arg0[%c0, %c0_0] : memref<16x16xbf16, #tpu.memory_space<vmem>>, vector<16x16xbf16>
    %c0_1 = arith.constant 0 : index
    %c0_2 = arith.constant 0 : index
    %1 = vector.load %arg3[%c0_1, %c0_2] : memref<16x128xbf16, #tpu.memory_space<vmem>>, vector<16x128xbf16>
    %cst = arith.constant dense<0.000000e+00> : vector<16x128xf32>
    %2 = tpu.matmul %0, %1, %cst {dimension_numbers = #tpu.dot_dimension_numbers<[1], [0], [0], [1], [0, 0, 1, 1], [], []>} : vector<16x16xbf16>, vector<16x128xbf16>, vector<16x128xf32> -> vector<16x128xf32>
    %c0_3 = arith.constant 0 : index
    %c0_4 = arith.constant 0 : index
    %3 = vector.load %arg1[%c0_3, %c0_4] : memref<16x16xbf16, #tpu.memory_space<vmem>>, vector<16x16xbf16>
    %c0_5 = arith.constant 0 : index
    %c0_6 = arith.constant 0 : index
    %4 = vector.load %arg4[%c0_5, %c0_6] : memref<16x128xbf16, #tpu.memory_space<vmem>>, vector<16x128xbf16>
    %cst_7 = arith.constant dense<0.000000e+00> : vector<16x128xf32>
    %5 = tpu.matmul %3, %4, %cst_7 {dimension_numbers = #tpu.dot_dimension_numbers<[1], [0], [0], [1], [0, 0, 1, 1], [], []>} : vector<16x16xbf16>, vector<16x128xbf16>, vector<16x128xf32> -> vector<16x128xf32>
    %6 = tpu.concatenate %2, %5 in 1 : vector<16x128xf32>, vector<16x128xf32> -> vector<16x256xf32>
    %7 = arith.truncf %6 : vector<16x256xf32> to vector<16x256xbf16>
    %c0_8 = arith.constant 0 : index
    %c0_9 = arith.constant 0 : index
    %8 = vector.load %arg5[%c0_8, %c0_9] : memref<256x128xbf16, #tpu.memory_space<vmem>>, vector<256x128xbf16>
    %cst_10 = arith.constant dense<0.000000e+00> : vector<16x128xf32>
    %9 = tpu.matmul %7, %8, %cst_10 {dimension_numbers = #tpu.dot_dimension_numbers<[1], [0], [0], [1], [0, 0, 1, 1], [], []>} : vector<16x256xbf16>, vector<256x128xbf16>, vector<16x128xf32> -> vector<16x128xf32>
    %c0_11 = arith.constant 0 : index
    %c0_12 = arith.constant 0 : index
    %10 = vector.load %arg6[%c0_11, %c0_12] : memref<1x128xf32, #tpu.memory_space<vmem>>, vector<1x128xf32>
    %11 = vector.broadcast %10 : vector<1x128xf32> to vector<16x128xf32>
    %12 = arith.addf %9, %11 : vector<16x128xf32>
    %cst_13 = arith.constant 0.000000e+00 : f32
    %13 = vector.broadcast %cst_13 : f32 to vector<16x128xf32>
    %14 = arith.maximumf %12, %13 : vector<16x128xf32>
    %c0_14 = arith.constant 0 : index
    %c0_15 = arith.constant 0 : index
    %15 = vector.load %arg2[%c0_14, %c0_15] : memref<16x16xbf16, #tpu.memory_space<vmem>>, vector<16x16xbf16>
    %c0_16 = arith.constant 0 : index
    %c0_17 = arith.constant 0 : index
    %16 = vector.load %arg3[%c0_16, %c0_17] : memref<16x128xbf16, #tpu.memory_space<vmem>>, vector<16x128xbf16>
    %cst_18 = arith.constant dense<0.000000e+00> : vector<16x128xf32>
    %17 = tpu.matmul %15, %16, %cst_18 {dimension_numbers = #tpu.dot_dimension_numbers<[1], [0], [0], [1], [0, 0, 1, 1], [], []>} : vector<16x16xbf16>, vector<16x128xbf16>, vector<16x128xf32> -> vector<16x128xf32>
    %18 = arith.truncf %17 : vector<16x128xf32> to vector<16x128xbf16>
    %c0_19 = arith.constant 0 : index
    %c0_20 = arith.constant 0 : index
    %19 = vector.load %arg7[%c0_19, %c0_20] : memref<128x128xbf16, #tpu.memory_space<vmem>>, vector<128x128xbf16>
    %cst_21 = arith.constant dense<0.000000e+00> : vector<16x128xf32>
    %20 = tpu.matmul %18, %19, %cst_21 {dimension_numbers = #tpu.dot_dimension_numbers<[1], [0], [0], [1], [0, 0, 1, 1], [], []>} : vector<16x128xbf16>, vector<128x128xbf16>, vector<16x128xf32> -> vector<16x128xf32>
    %c0_22 = arith.constant 0 : index
    %c0_23 = arith.constant 0 : index
    %21 = vector.load %arg8[%c0_22, %c0_23] : memref<1x128xf32, #tpu.memory_space<vmem>>, vector<1x128xf32>
    %22 = vector.broadcast %21 : vector<1x128xf32> to vector<16x128xf32>
    %23 = arith.addf %20, %22 : vector<16x128xf32>
    %cst_24 = arith.constant 0.000000e+00 : f32
    %24 = vector.broadcast %cst_24 : f32 to vector<16x128xf32>
    %25 = arith.maximumf %23, %24 : vector<16x128xf32>
    %c0_25 = arith.constant 0 : index
    %c0_26 = arith.constant 0 : index
    %26 = vector.load %arg9[%c0_25, %c0_26] : memref<1x16xf32, #tpu.memory_space<vmem>>, vector<1x16xf32>
    %cst_27 = arith.constant dense<0.000000e+00> : vector<1x128xf32>
    %27 = tpu.matmul %26, %14, %cst_27 {dimension_numbers = #tpu.dot_dimension_numbers<[1], [0], [0], [1], [0, 0, 1, 1], [], []>} : vector<1x16xf32>, vector<16x128xf32>, vector<1x128xf32> -> vector<1x128xf32>
    %c0_28 = arith.constant 0 : index
    %c0_29 = arith.constant 0 : index
    %28 = vector.load %arg10[%c0_28, %c0_29] : memref<1x16xf32, #tpu.memory_space<vmem>>, vector<1x16xf32>
    %cst_30 = arith.constant dense<0.000000e+00> : vector<1x128xf32>
    %29 = tpu.matmul %28, %25, %cst_30 {dimension_numbers = #tpu.dot_dimension_numbers<[1], [0], [0], [1], [0, 0, 1, 1], [], []>} : vector<1x16xf32>, vector<16x128xf32>, vector<1x128xf32> -> vector<1x128xf32>
    %c0_31 = arith.constant 0 : index
    %c0_32 = arith.constant 0 : index
    %30 = vector.load %arg11[%c0_31, %c0_32] : memref<1x16xf32, #tpu.memory_space<vmem>>, vector<1x16xf32>
    %cst_33 = arith.constant dense<0.000000e+00> : vector<1x128xf32>
    %31 = tpu.matmul %30, %14, %cst_33 {dimension_numbers = #tpu.dot_dimension_numbers<[1], [0], [0], [1], [0, 0, 1, 1], [], []>} : vector<1x16xf32>, vector<16x128xf32>, vector<1x128xf32> -> vector<1x128xf32>
    %32 = tpu.concatenate %27, %29, %31 in 1 : vector<1x128xf32>, vector<1x128xf32>, vector<1x128xf32> -> vector<1x384xf32>
    %c0_34 = arith.constant 0 : index
    %c0_35 = arith.constant 0 : index
    %33 = vector.load %arg12[%c0_34, %c0_35] : memref<384x128xf32, #tpu.memory_space<vmem>>, vector<384x128xf32>
    %cst_36 = arith.constant dense<0.000000e+00> : vector<1x128xf32>
    %34 = tpu.matmul %32, %33, %cst_36 {dimension_numbers = #tpu.dot_dimension_numbers<[1], [0], [0], [1], [0, 0, 1, 1], [], []>} : vector<1x384xf32>, vector<384x128xf32>, vector<1x128xf32> -> vector<1x128xf32>
    %c0_37 = arith.constant 0 : index
    %c0_38 = arith.constant 0 : index
    %35 = vector.load %arg13[%c0_37, %c0_38] : memref<1x128xf32, #tpu.memory_space<vmem>>, vector<1x128xf32>
    %36 = arith.addf %34, %35 : vector<1x128xf32>
    %c0_39 = arith.constant 0 : index
    %c0_40 = arith.constant 0 : index
    %37 = vector.load %arg14[%c0_39, %c0_40] : memref<1x128xf32, #tpu.memory_space<vmem>>, vector<1x128xf32>
    tpu.vector_store %arg14[%c0_39, %c0_40], %36 {strides = array<i32>} : memref<1x128xf32, #tpu.memory_space<vmem>>, vector<1x128xf32>,
    return
  }
}

</mosaic_0001>

<bundles_post_ra>
// kernel: tpu_custom_call.1
= control target key start
LH: loop header
LB: loop body
LE: loop exit
PB: predicated region body
PF: predicated region fallthrough
CT: control target
= control target key end

     0   :  { %19 = vsyncpa [#allocation3], 0  ;;  %s1730_s0 = inlined_call_operand.hbm [shape: bf16[16,16], index: 0, kind: input, shape index: {}]   ;;  %s1731_s1 = inlined_call_operand.hbm [shape: bf16[16,16], index: 1, kind: input, shape index: {}]   ;;  %s1732_s2 = inlined_call_operand.hbm [shape: bf16[16,16], index: 2, kind: input, shape index: {}]   ;;  %s1733_s3 = inlined_call_operand.hbm [shape: bf16[16,128], index: 3, kind: input, shape index: {}]   ;;  %s1734_s4 = inlined_call_operand.hbm [shape: bf16[16,128], index: 4, kind: input, shape index: {}]   ;;  %s1735_s5 = inlined_call_operand.hbm [shape: bf16[256,128], index: 5, kind: input, shape index: {}]   ;;  %s1736_s6 = inlined_call_operand.vmem [shape: f32[1,128], index: 6, kind: input, shape index: {}]   ;;  %s1737_s7 = inlined_call_operand.hbm [shape: bf16[128,128], index: 7, kind: input, shape index: {}]   ;;  %s1738_s8 = inlined_call_operand.vmem [shape: f32[1,128], index: 8, kind: input, shape index: {}]   ;;  %s1739_s9 = inlined_call_operand.vmem [shape: f32[1,16], index: 9, kind: input, shape index: {}]   ;;  %s1740_s10 = inlined_call_operand.vmem [shape: f32[1,16], index: 10, kind: input, shape index: {}]   ;;  %s1741_s11 = inlined_call_operand.vmem [shape: f32[1,16], index: 11, kind: input, shape index: {}]   ;;  %s1742_s12 = inlined_call_operand.hbm [shape: f32[384,128], index: 12, kind: input, shape index: {}]   ;;  %s1743_s13 = inlined_call_operand.vmem [shape: f32[1,128], index: 13, kind: input, shape index: {}]   ;;  %s1744_s14 = inlined_call_operand.hbm [shape: f32[1,128], index: 14, kind: output, shape index: {}]  }
   0x1   :  { %20 = vsyncpa [#allocation6], 0 }
   0x2   :  { %21 = vsyncpa [#allocation9], 0 }
   0x3   :  { %22 = vsyncpa [#allocation12], 0 }
   0x4   :  { %23 = vsyncpa [#allocation15], 0 }
   0x5   :  { %24 = vsyncpa [#allocation4], 0  ;;  %s1519_s29 = smov [#allocation5]   ;;  %s1520_s15 = smov [#allocation8]  }
   0x6   :  { %s42_s30 = sshll.u32 %s1519_s29, 4  ;;  %s66_s16 = sshll.u32 %s1520_s15, 4  ;;  %s43_s30 = int_to_ptr.vmem [resolvable:$true] %s42_s30  ;;  %s67_s16 = int_to_ptr.vmem [resolvable:$true] %s66_s16 }
   0x7   :  { %s1335_s17 = scalar_lea.vmem %s43_s30, 128  ;;  %p1340_p1 = scmp.lt.s32.totalorder %s43_s30, %s43_s30 }
   0x8   :  { %p1336_p0 = scmp.ne.s32.totalorder %s43_s30, %s1335_s17  ;;  %p1341_p2 = scmp.lt.s32.totalorder %s1335_s17, %s1335_s17 }
   0xa   :  { %p1342_p3 = por %p1341_p2, %p1340_p1 }
   0xc   :  { %p1343_p4 = pnand %p1342_p3, %p1336_p0 }
   0xe   :  { %1346 = shalt.err (!%p1343_p4)
}
   0xf   :  { %s1521_s18 = smov 64   ;;  %s1522_s19 = smov 4  }
  0x10   :  { %48 = dma.hbm_to_vmem [thread:$0]  %s1731_s1, 128, %s43_s30, [#allocation6], %s1521_s18, %s1521_s18, %s1522_s19  }
  0x11   :  { %s1355_s22 = scalar_lea.vmem %s67_s16, 128  ;;  %p1360_p6 = scmp.lt.s32.totalorder %s67_s16, %s67_s16 }
  0x12   :  { %p1356_p5 = scmp.ne.s32.totalorder %s67_s16, %s1355_s22  ;;  %p1361_p7 = scmp.lt.s32.totalorder %s1355_s22, %s1355_s22 }
  0x14   :  { %p1362_p8 = por %p1361_p7, %p1360_p6 }
  0x16   :  { %p1363_p9 = pnand %p1362_p8, %p1356_p5 }
  0x18   :  { %1366 = shalt.err (!%p1363_p9)
}
  0x19   :  { %72 = dma.hbm_to_vmem [thread:$0]  %s1733_s3, 128, %s67_s16, [#allocation9], %s1521_s18, %s1521_s18, %s1522_s19  }
  0x1a   :  { %s1523_s25 = smov [#allocation11]   ;;  %s1524_s27 = smov [#allocation2]  }
  0x1b   :  { %s90_s26 = sshll.u32 %s1523_s25, 4  ;;  %s30_s28 = sshll.u32 %s1524_s27, 4  ;;  %s91_s26 = int_to_ptr.vmem [resolvable:$true] %s90_s26  ;;  %s31_s28 = int_to_ptr.vmem [resolvable:$true] %s30_s28 }
  0x1c   :  { %s1375_s1 = scalar_lea.vmem %s91_s26, 2048  ;;  %p1380_p11 = scmp.lt.s32.totalorder %s91_s26, %s91_s26 }
  0x1d   :  { %p1376_p10 = scmp.ne.s32.totalorder %s91_s26, %s1375_s1  ;;  %p1381_p12 = scmp.lt.s32.totalorder %s1375_s1, %s1375_s1 }
  0x1f   :  { %p1382_p13 = por %p1381_p12, %p1380_p11 }
  0x21   :  { %p1383_p0 = pnand %p1382_p13, %p1376_p10 }
  0x23   :  { %1386 = shalt.err (!%p1383_p0)
}
  0x24   :  { %96 = dma.hbm_to_vmem [thread:$0]  %s1735_s5, 2048, %s91_s26, [#allocation12], %s1521_s18, %s1521_s18, %s1522_s19  }
  0x25   :  { %s1395_s3 = scalar_lea.vmem %s31_s28, 128  ;;  %p1400_p2 = scmp.lt.s32.totalorder %s31_s28, %s31_s28 }
  0x26   :  { %p1396_p1 = scmp.ne.s32.totalorder %s31_s28, %s1395_s3  ;;  %p1401_p3 = scmp.lt.s32.totalorder %s1395_s3, %s1395_s3 }
  0x28   :  { %p1402_p4 = por %p1401_p3, %p1400_p2 }
  0x2a   :  { %p1403_p5 = pnand %p1402_p4, %p1396_p1 }
  0x2c   :  { %1406 = shalt.err (!%p1403_p5)
}
  0x2d   :  { %36 = dma.hbm_to_vmem [thread:$0]  %s1730_s0, 128, %s31_s28, [#allocation3], %s1521_s18, %s1521_s18, %s1522_s19  }
  0x2e   :  { %s1525_s17 = smov [#allocation7]   ;;  %s1526_s21 = smov [#allocation10]  }
  0x2f   :  { %s54_s20 = sshll.u32 %s1525_s17, 4  ;;  %s78_s22 = sshll.u32 %s1526_s21, 4  ;;  %s55_s20 = int_to_ptr.vmem [resolvable:$true] %s54_s20  ;;  %s79_s22 = int_to_ptr.vmem [resolvable:$true] %s78_s22 }
  0x30   :  { %s1415_s5 = scalar_lea.vmem %s55_s20, 128  ;;  %p1420_p7 = scmp.lt.s32.totalorder %s55_s20, %s55_s20 }
  0x31   :  { %p1416_p6 = scmp.ne.s32.totalorder %s55_s20, %s1415_s5  ;;  %p1421_p8 = scmp.lt.s32.totalorder %s1415_s5, %s1415_s5 }
  0x33   :  { %p1422_p9 = por %p1421_p8, %p1420_p7 }
  0x35   :  { %p1423_p10 = pnand %p1422_p9, %p1416_p6 }
  0x37   :  { %1426 = shalt.err (!%p1423_p10)
}
  0x38   :  { %60 = dma.hbm_to_vmem [thread:$0]  %s1732_s2, 128, %s55_s20, [#allocation6], %s1521_s18, %s1521_s18, %s1522_s19  }
  0x39   :  { %s1435_s0 = scalar_lea.vmem %s79_s22, 128  ;;  %p1440_p12 = scmp.lt.s32.totalorder %s79_s22, %s79_s22 }
  0x3a   :  { %p1436_p11 = scmp.ne.s32.totalorder %s79_s22, %s1435_s0  ;;  %p1441_p13 = scmp.lt.s32.totalorder %s1435_s0, %s1435_s0 }
  0x3c   :  { %p1442_p0 = por %p1441_p13, %p1440_p12 }
  0x3e   :  { %p1443_p1 = pnand %p1442_p0, %p1436_p11 }
  0x40   :  { %1446 = shalt.err (!%p1443_p1)
}
  0x41   :  { %84 = dma.hbm_to_vmem [thread:$0]  %s1734_s4, 128, %s79_s22, [#allocation9], %s1521_s18, %s1521_s18, %s1522_s19  }
  0x42   :  { %s1527_s27 = smov [#allocation13]   ;;  %s1528_s1 = smov [#allocation14]  }
  0x43   :  { %s104_s28 = sshll.u32 %s1527_s27, 4  ;;  %s124_s29 = sshll.u32 %s1528_s1, 4  ;;  %s105_s28 = int_to_ptr.vmem [resolvable:$true] %s104_s28  ;;  %s125_s29 = int_to_ptr.vmem [resolvable:$true] %s124_s29 }
  0x44   :  { %s1455_s2 = scalar_lea.vmem %s105_s28, 1024  ;;  %p1460_p3 = scmp.lt.s32.totalorder %s105_s28, %s105_s28 }
  0x45   :  { %p1456_p2 = scmp.ne.s32.totalorder %s105_s28, %s1455_s2  ;;  %p1461_p4 = scmp.lt.s32.totalorder %s1455_s2, %s1455_s2 }
  0x47   :  { %p1462_p5 = por %p1461_p4, %p1460_p3 }
  0x49   :  { %p1463_p6 = pnand %p1462_p5, %p1456_p2 }
  0x4b   :  { %1466 = shalt.err (!%p1463_p6)
}
  0x4c   :  { %110 = dma.hbm_to_vmem [thread:$0]  %s1737_s7, 1024, %s105_s28, [#allocation12], %s1521_s18, %s1521_s18, %s1522_s19  }
  0x4d   :  { %s1475_s4 = scalar_lea.vmem %s125_s29, 6144  ;;  %p1480_p8 = scmp.lt.s32.totalorder %s125_s29, %s125_s29 }
  0x4e   :  { %p1476_p7 = scmp.ne.s32.totalorder %s125_s29, %s1475_s4  ;;  %p1481_p9 = scmp.lt.s32.totalorder %s1475_s4, %s1475_s4 }
  0x50   :  { %p1482_p10 = por %p1481_p9, %p1480_p8 }
  0x52   :  { %p1483_p11 = pnand %p1482_p10, %p1476_p7 }
  0x54   :  { %1486 = shalt.err (!%p1483_p11)
}
  0x55   :  { %s1529_s15 = smov 128   ;;  %s1530_s16 = smov 8  }
  0x56   :  { %130 = dma.hbm_to_vmem [thread:$0]  %s1742_s12, 6144, %s125_s29, [#allocation15], %s1529_s15, %s1529_s15, %s1530_s16  }
  0x57   :  { %1507 = dma.done.wait [#allocation3], 128  }
  0x58   :  { %1508 = vsyncadd [#allocation3], 4294967168 }
  0x59   :  { %1509 = dma.done.wait [#allocation6], 256  }
  0x5a   :  { %1510 = vsyncadd [#allocation6], 4294967040 }
  0x5b   :  { %1511 = dma.done.wait [#allocation9], 256  }
  0x5c   :  { %1512 = vsyncadd [#allocation9], 4294967040 }
  0x5d   :  { %1513 = dma.done.wait [#allocation12], 3072  }
  0x5e   :  { %1514 = vsyncadd [#allocation12], 4294964224 }
  0x5f   :  { %1515 = dma.done.wait [#allocation15], 6144  }
  0x60   :  { %1516 = vsyncadd [#allocation15], 4294961152  ;;  %v1531_v0 = vmov 0.0   ;;  %vm1532_vm0 = vmmov 0   ;;  %v1298_v1 = vld [vmem:[#allocation8] sm:$0xff]   ;;  %v1299_v2 = vld [vmem:[#allocation10] sm:$0xff]  }
  0x61   :  { %1189 = vmatprep.subr.bf16.mxu0 %v1531_v0  ;;  %1195 = vmatprep.subr.bf16.mxu1 %v1531_v0  ;;  %v1300_v3 = vld [vmem:[#allocation2] sm:$0xff]   ;;  %vm173_vm1 = vcmask 130048   ;;  %v1301_v4 = vld [vmem:[#allocation5] sm:$0xff]   ;;  %v1305_v7 = vld [vmem:[#allocation11 + $0x70] sm:$0xff]   ;;  %s1533_s23 = smov [#allocation16]  }
  0x62   :  { %1191 = vmatprep.mubr.msk.bf16.mxu0 %vm1532_vm0, %v1531_v0  ;;  %1197 = vmatprep.mubr.msk.bf16.mxu1 %vm1532_vm0, %v1531_v0  ;;  %v1303_v5 = vld [vmem:[#allocation11 + $0x78] sm:$0xff]   ;;  %v1302_v8 = vld [vmem:[#allocation7] sm:$0xff]   ;;  %v1306_v9 = vld [vmem:[#allocation11 + $0x30] sm:$0xff]   ;;  %s1041_s24 = sshll.u32 %s1533_s23, 4  ;;  %s1042_s24 = int_to_ptr.vmem [resolvable:$true] %s1041_s24 }
  0x63   :  { %1190 = vmatpush3.bf16.msra.mxu0 %v1298_v1  ;;  %1196 = vmatpush3.bf16.msra.mxu1 %v1299_v2  ;;  %v1304_v6 = vld [vmem:[#allocation11 + $0x38] sm:$0xff]   ;;  %v1307_v10 = vld [vmem:[#allocation11 + $0x68] sm:$0xff]   ;;  %v1310_v13 = vld [vmem:[#allocation11 + $0x60] sm:$0xff]   ;;  %s1487_s0 = scalar_lea.vmem %s1042_s24, 16  ;;  %s1491_s25 = scalar_lea.vmem %s1042_s24, 32 }
  0x64   :  { %1201 = vmatprep.subr.bf16.mxu1 %v1531_v0  ;;  %1095 = vmatprep.subr.bf16.mxu0 %v1303_v5  ;;  %v1308_v11 = vld [vmem:[#allocation13 + $0x38] sm:$0xff]   ;;  %v1309_v12 = vld [vmem:[#allocation11 + $0x28] sm:$0xff]   ;;  %v1311_v14 = vld [vmem:[#allocation13 + $0x30] sm:$0xff]   ;;  %p1488_p12 = scmp.ne.s32.totalorder %s1042_s24, %s1487_s0  ;;  %p1492_p13 = scmp.lt.s32.totalorder %s1042_s24, %s1042_s24 }
  0x65   :  { %v1312_v15 = vld [vmem:[#allocation11 + $0x20] sm:$0xff]   ;;  %v1313_v16 = vld [vmem:[#allocation11 + $0x58] sm:$0xff]   ;;  %v1314_v17 = vld [vmem:[#allocation13 + $0x28] sm:$0xff]   ;;  %p1493_p0 = scmp.lt.s32.totalorder %s1491_s25, %s1487_s0 }
  0x66   :  { %1192 = vmatmul.mubr.msk.bf16.vlgmr.msra.gmra.mxu0 %vm173_vm1, %v1300_v3  ;;  %1198 = vmatmul.mubr.msk.bf16.vlgmr.msra.gmra.mxu1 %vm173_vm1, %v1301_v4  ;;  %v1315_v18 = vld [vmem:[#allocation11 + $0x18] sm:$0xff]   ;;  %v1316_v19 = vld [vmem:[#allocation11 + $0x50] sm:$0xff]   ;;  %v1317_v20 = vld [vmem:[#allocation13 + $0x20] sm:$0xff]  }
  0x67   :  { %1202 = vmatpush3.bf16.msra.mxu1 %v1298_v1  ;;  %1203 = vmatprep.mubr.msk.bf16.mxu1 %vm1532_vm0, %v1531_v0  ;;  %v1318_v21 = vld [vmem:[#allocation11 + $0x10] sm:$0xff]   ;;  %v1319_v22 = vld [vmem:[#allocation11 + $0x48] sm:$0xff]   ;;  %v1320_v23 = vld [vmem:[#allocation13 + $0x18] sm:$0xff]   ;;  %p1494_p1 = por %p1493_p0, %p1492_p13 }
  0x68   :  { %1207 = vmatprep.subr.bf16.mxu1 %v1531_v0  ;;  %1096 = vmatpush3.bf16.msra.mxu0 %v1304_v6  ;;  %v1321_v24 = vld [vmem:[#allocation11 + $0x8] sm:$0xff]   ;;  %v1322_v25 = vld [vmem:[#allocation11 + $0x40] sm:$0xff]   ;;  %v1323_v26 = vld [vmem:[#allocation13 + $0x10] sm:$0xff]  }
  0x69   :  { %1097 = vmatprep.subr.bf16.mxu0 %v1305_v7  ;;  %v1324_v27 = vld [vmem:[#allocation11] sm:$0xff]   ;;  %v1325_v28 = vld [vmem:[#allocation13 + $0x8] sm:$0xff]   ;;  %v876_v45 = vld [vmem:[#allocation14 + $0xf8] sm:$0xff]  ;;  %p1495_p2 = pnand %p1494_p1, %p1488_p12 }
  0x6a   :  { %v1326_v29 = vld [vmem:[#allocation13] sm:$0xff]   ;;  %v860_v46 = vld [vmem:[#allocation14 + $0x78] sm:$0xff]  ;;  %v875_v47 = vld [vmem:[#allocation14 + $0xf0] sm:$0xff] }
  0x6b   :  { %v859_v48 = vld [vmem:[#allocation14 + $0x70] sm:$0xff]  ;;  %v874_v49 = vld [vmem:[#allocation14 + $0xe8] sm:$0xff]  ;;  %v873_v51 = vld [vmem:[#allocation14 + $0xe0] sm:$0xff] }
  0x6c   :  { %1098 = vmatpush3.bf16.msra.mxu0 %v1306_v9  ;;  %v858_v50 = vld [vmem:[#allocation14 + $0x68] sm:$0xff]  ;;  %v857_v52 = vld [vmem:[#allocation14 + $0x60] sm:$0xff]  ;;  %v872_v53 = vld [vmem:[#allocation14 + $0xd8] sm:$0xff] }
  0x6d   :  { %1099 = vmatprep.subr.bf16.mxu0 %v1307_v10  ;;  %v856_v54 = vld [vmem:[#allocation14 + $0x58] sm:$0xff]  ;;  %v871_v55 = vld [vmem:[#allocation14 + $0xd0] sm:$0xff]  ;;  %v870_v57 = vld [vmem:[#allocation14 + $0xc8] sm:$0xff] }
  0x6e   :  { %1204 = vmatmul.mubr.msk.bf16.vlgmr.msra.gmra.mxu1 %vm173_vm1, %v1302_v8  ;;  %v855_v56 = vld [vmem:[#allocation14 + $0x50] sm:$0xff]  ;;  %v854_v58 = vld [vmem:[#allocation14 + $0x48] sm:$0xff]  ;;  %v869_v59 = vld [vmem:[#allocation14 + $0xc0] sm:$0xff] }
  0x6f   :  { %1208 = vmatpush3.bf16.msra.mxu1 %v1308_v11  ;;  %1223 = vmatprep.mubr.msk.bf16.mxu1 %vm1532_vm0, %v1531_v0  ;;  %v853_v60 = vld [vmem:[#allocation14 + $0x40] sm:$0xff]  ;;  %v868_v61 = vld [vmem:[#allocation14 + $0xb8] sm:$0xff]  ;;  %v867_v63 = vld [vmem:[#allocation14 + $0xb0] sm:$0xff] }
  0x70   :  { %1209 = vmatprep.subr.bf16.mxu1 %v1531_v0  ;;  %1100 = vmatpush3.bf16.msra.mxu0 %v1309_v12  ;;  %v852_v62 = vld [vmem:[#allocation14 + $0x38] sm:$0xff]  ;;  %v851_v1 = vld [vmem:[#allocation14 + $0x30] sm:$0xff]  ;;  %v866_v2 = vld [vmem:[#allocation14 + $0xa8] sm:$0xff] }
  0x71   :  { %1101 = vmatprep.subr.bf16.mxu0 %v1310_v13  ;;  %v850_v3 = vld [vmem:[#allocation14 + $0x28] sm:$0xff]  ;;  %v865_v4 = vld [vmem:[#allocation14 + $0xa0] sm:$0xff]  ;;  %v864_v6 = vld [vmem:[#allocation14 + $0x98] sm:$0xff] }
  0x72   :  { %v849_v5 = vld [vmem:[#allocation14 + $0x20] sm:$0xff]  ;;  %v848_v7 = vld [vmem:[#allocation14 + $0x18] sm:$0xff] }
  0x73   :  { %1210 = vmatpush3.bf16.msra.mxu1 %v1311_v14  ;;  %v1060_v12 = vld [vmem:[%s1736_s6] ss:$0 sm:$0xff] }
  0x74   :  { %1211 = vmatprep.subr.bf16.mxu1 %v1531_v0  ;;  %1102 = vmatpush3.bf16.msra.mxu0 %v1312_v15 }
  0x75   :  { %1103 = vmatprep.subr.bf16.mxu0 %v1313_v16 }
  0x77   :  { %1212 = vmatpush3.bf16.msra.mxu1 %v1314_v17 }
  0x78   :  { %1213 = vmatprep.subr.bf16.mxu1 %v1531_v0  ;;  %1104 = vmatpush3.bf16.msra.mxu0 %v1315_v18 }
  0x79   :  { %1105 = vmatprep.subr.bf16.mxu0 %v1316_v19  ;;  %v1079_v19 = vld [vmem:[%s1738_s8] ss:$0 sm:$0xff] }
  0x7b   :  { %1214 = vmatpush3.bf16.msra.mxu1 %v1317_v20 }
  0x7c   :  { %1215 = vmatprep.subr.bf16.mxu1 %v1531_v0  ;;  %1106 = vmatpush3.bf16.msra.mxu0 %v1318_v21 }
  0x7d   :  { %1107 = vmatprep.subr.bf16.mxu0 %v1319_v22 }
  0x7f   :  { %1216 = vmatpush3.bf16.msra.mxu1 %v1320_v23 }
  0x80   :  { %1108 = vmatpush3.bf16.msra.mxu0 %v1321_v24  ;;  %1217 = vmatprep.subr.bf16.mxu1 %v1531_v0 }
  0x81   :  { %1109 = vmatprep.subr.bf16.mxu0 %v1322_v25 }
  0x83   :  { %1218 = vmatpush3.bf16.msra.mxu1 %v1323_v26  ;;  %v623_v26 = vld [vmem:[%s1739_s9] sm:$0x1] }
  0x84   :  { %1110 = vmatpush3.bf16.msra.mxu0 %v1324_v27  ;;  %1219 = vmatprep.subr.bf16.mxu1 %v1531_v0 }
  0x85   :  { %1227 = vmatprep.subr.mxu0 %v1531_v0 }
  0x87   :  { %1220 = vmatpush3.bf16.msra.mxu1 %v1325_v28 }
  0x88   :  { %1221 = vmatprep.subr.bf16.mxu1 %v1531_v0 }
  0x8b   :  { %1222 = vmatpush3.bf16.msra.mxu1 %v1326_v29  ;;  %v697_v29 = vld [vmem:[%s1740_s10] sm:$0x1] }
  0x8c   :  { %1137 = vmatprep.subr.mxu1 %v876_v45  ;;  %v862_v45 = vld [vmem:[#allocation14 + $0x88] sm:$0xff] }
 0x126   :  { %v211_v30 = vpop.f32.mrf.mxu0  ;;  %v270_v31 = vpop.f32.mrf.mxu1 }
 0x128   :  { %v1193_v32 = vpop.f32.mrf.mxu0  ;;  %v1199_v33 = vpop.f32.mrf.mxu1 }
 0x129   :  { %v891_v32 = vld [vmem:[#allocation14 + $0x170] sm:$0xff]  ;;  %v890_v33 = vld [vmem:[#allocation14 + $0x168] sm:$0xff] }
 0x12a   :  { %v214_v34 = vpop.f32.mrf.mxu0  ;;  %v273_v36 = vpop.f32.mrf.mxu1 }
 0x12b   :  { %v277_v35 = vpack.c.bf16 %v214_v34, %v211_v30  ;;  %v278_v37 = vpack.c.bf16 %v273_v36, %v270_v31  ;;  %v771_v30 = vld [vmem:[%s1741_s11] sm:$0x1]  ;;  %v889_v34 = vld [vmem:[#allocation14 + $0x160] sm:$0xff]  ;;  %v887_v36 = vld [vmem:[#allocation14 + $0x150] sm:$0xff] }
 0x12c   :  { %v1194_v38 = vpop.f32.mrf.mxu0  ;;  %v1200_v39 = vpop.f32.mrf.mxu1  ;;  %v892_v31 = vld [vmem:[#allocation14 + $0x178] sm:$0xff] }
 0x12d   :  { %446 = vmatprep.mubr.bf16.mxu0 %v278_v37  ;;  %v886_v37 = vld [vmem:[#allocation14 + $0x148] sm:$0xff]  ;;  %v885_v38 = vld [vmem:[#allocation14 + $0x140] sm:$0xff]  ;;  %v884_v39 = vld [vmem:[#allocation14 + $0x138] sm:$0xff] }
 0x12e   :  { %447 = vmatmul.mubr.bf16.vlgmr.msra.gmra.mxu0 %v277_v35  ;;  %v501_v40 = vpop.f32.mrf.mxu1  ;;  %v888_v35 = vld [vmem:[#allocation14 + $0x158] sm:$0xff] }
 0x12f   :  { %1231 = vmatprep.mubr.msk.f32.mxu0 %vm1532_vm0, %v1531_v0 }
 0x130   :  { %v1205_v41 = vpop.f32.mrf.mxu1 }
 0x131   :  { %v882_v41 = vld [vmem:[#allocation14 + $0x128] sm:$0xff] }
 0x132   :  { %v504_v42 = vpop.f32.mrf.mxu1 }
 0x133   :  { %v508_v43 = vpack.c.bf16 %v504_v42, %v501_v40  ;;  %v883_v40 = vld [vmem:[#allocation14 + $0x130] sm:$0xff] }
 0x134   :  { %v1206_v44 = vpop.f32.mrf.mxu1  ;;  %v863_v42 = vld [vmem:[#allocation14 + $0x90] sm:$0xff] }
 0x135   :  { %1224 = vmatmul.mubr.bf16.vlgmr.msra.gmra.mxu1 %v508_v43  ;;  %v847_v43 = vld [vmem:[#allocation14 + $0x10] sm:$0xff]  ;;  %v881_v44 = vld [vmem:[#allocation14 + $0x120] sm:$0xff] }
 0x136   :  { %1138 = vmatpush3.msra.mxu1 %v860_v46  ;;  %v846_v46 = vld [vmem:[#allocation14 + $0x8] sm:$0xff] }
 0x137   :  { %1139 = vmatprep.subr.mxu1 %v875_v47  ;;  %v880_v47 = vld [vmem:[#allocation14 + $0x118] sm:$0xff] }
 0x138   :  { %1140 = vmatpush3.msra.mxu1 %v859_v48  ;;  %v861_v48 = vld [vmem:[#allocation14 + $0x80] sm:$0xff] }
 0x139   :  { %1141 = vmatprep.subr.mxu1 %v874_v49  ;;  %v845_v49 = vld [vmem:[#allocation14] sm:$0xff] }
 0x13a   :  { %1142 = vmatpush3.msra.mxu1 %v858_v50  ;;  %v879_v50 = vld [vmem:[#allocation14 + $0x110] sm:$0xff] }
 0x13b   :  { %1143 = vmatprep.subr.mxu1 %v873_v51  ;;  %v878_v51 = vld [vmem:[#allocation14 + $0x108] sm:$0xff] }
 0x13c   :  { %1144 = vmatpush3.msra.mxu1 %v857_v52  ;;  %v877_v52 = vld [vmem:[#allocation14 + $0x100] sm:$0xff] }
 0x13d   :  { %1145 = vmatprep.subr.mxu1 %v872_v53 }
 0x13e   :  { %1146 = vmatpush3.msra.mxu1 %v856_v54 }
 0x13f   :  { %1147 = vmatprep.subr.mxu1 %v871_v55 }
 0x140   :  { %1148 = vmatpush3.msra.mxu1 %v855_v56 }
 0x141   :  { %1149 = vmatprep.subr.mxu1 %v870_v57 }
 0x142   :  { %1150 = vmatpush3.msra.mxu1 %v854_v58 }
 0x143   :  { %1151 = vmatprep.subr.mxu1 %v869_v59 }
 0x144   :  { %1152 = vmatpush3.msra.mxu1 %v853_v60 }
 0x145   :  { %1153 = vmatprep.subr.mxu1 %v868_v61  ;;  %v893_v61 = vld [vmem:[%s1743_s13] sm:$0x1] }
 0x146   :  { %1154 = vmatpush3.msra.mxu1 %v852_v62 }
 0x147   :  { %1155 = vmatprep.subr.mxu1 %v867_v63 }
 0x148   :  { %1156 = vmatpush3.msra.mxu1 %v851_v1 }
 0x149   :  { %1157 = vmatprep.subr.mxu1 %v866_v2 }
 0x14a   :  { %1158 = vmatpush3.msra.mxu1 %v850_v3 }
 0x14b   :  { %1159 = vmatprep.subr.mxu1 %v865_v4 }
 0x14c   :  { %1160 = vmatpush3.msra.mxu1 %v849_v5 }
 0x14d   :  { %1161 = vmatprep.subr.mxu1 %v864_v6 }
 0x14e   :  { %1162 = vmatpush3.msra.mxu1 %v848_v7 }
 0x14f   :  { %1163 = vmatprep.subr.mxu1 %v863_v42 }
 0x150   :  { %1164 = vmatpush3.msra.mxu1 %v847_v43 }
 0x151   :  { %1165 = vmatprep.subr.mxu1 %v862_v45 }
 0x152   :  { %1166 = vmatpush3.msra.mxu1 %v846_v46 }
 0x153   :  { %1167 = vmatprep.subr.mxu1 %v861_v48 }
 0x154   :  { %1168 = vmatpush3.msra.mxu1 %v845_v49 }
 0x1ee   :  { %v1111_v8 = vpop.f32.mrf.mxu0 }
 0x1f0   :  { %v1112_v9 = vpop.f32.mrf.mxu0 }
 0x1f1   :  { %v1113_v11 = vadd.f32 %v1112_v9, %v1111_v8 }
 0x1f2   :  { %v1114_v10 = vpop.f32.mrf.mxu0 }
 0x1f3   :  { %v449_v16 = vadd.f32 %v1113_v11, %v1060_v12 }
 0x1f4   :  { %v1115_v13 = vpop.f32.mrf.mxu0 }
 0x1f5   :  { %v1116_v14 = vadd.f32 %v1115_v13, %v1114_v10  ;;  %v614_v15 = vpop.f32.mrf.mxu1  ;;  %v455_v23 = vmax.f32 %v449_v16, 0.0 }
 0x1f6   :  { %v615_v24 = vadd.f32 %v1079_v19, %v614_v15 }
 0x1f7   :  { %v452_v17 = vadd.f32 %v1116_v14, %v1060_v12  ;;  %v1225_v18 = vpop.f32.mrf.mxu1 }
 0x1f8   :  { %v621_v28 = vmax.f32 %v615_v24, 0.0 }
 0x1f9   :  { %v456_v20 = vmax.f32 %v452_v17, 0.0  ;;  %v617_v21 = vpop.f32.mrf.mxu1 }
 0x1fa   :  { %v618_v22 = vadd.f32 %v1079_v19, %v617_v21 }
 0x1fb   :  { %v1226_v25 = vpop.f32.mrf.mxu1  ;;  %1228 = vmatpush3.msra.mxu0 %v456_v20 }
 0x1fc   :  { %v622_v27 = vmax.f32 %v618_v22, 0.0  ;;  %1229 = vmatprep.subr.mxu0 %v1531_v0 }
 0x1fd   :  { %1230 = vmatpush3.msra.mxu0 %v455_v23 }
 0x1fe   :  { %1232 = vmatmul.mubr.msk.f32.vlgmr.msra.gmra.mxu0 %vm173_vm1, %v623_v26  ;;  %1234 = vmatprep.subr.mxu0 %v1531_v0 }
 0x1ff   :  { %1235 = vmatpush3.msra.mxu0 %v622_v27  ;;  %1238 = vmatprep.mubr.msk.f32.mxu0 %vm1532_vm0, %v1531_v0 }
 0x200   :  { %1236 = vmatprep.subr.mxu0 %v1531_v0 }
 0x201   :  { %1237 = vmatpush3.msra.mxu0 %v621_v28 }
 0x202   :  { %1239 = vmatmul.mubr.msk.f32.vlgmr.msra.gmra.mxu0 %vm173_vm1, %v697_v29  ;;  %1241 = vmatprep.subr.mxu0 %v1531_v0 }
 0x203   :  { %1242 = vmatpush3.msra.mxu0 %v456_v20  ;;  %1245 = vmatprep.mubr.msk.f32.mxu0 %vm1532_vm0, %v1531_v0 }
 0x204   :  { %1243 = vmatprep.subr.mxu0 %v1531_v0 }
 0x205   :  { %1244 = vmatpush3.msra.mxu0 %v455_v23 }
 0x206   :  { %1246 = vmatmul.mubr.msk.f32.vlgmr.msra.gmra.mxu0 %vm173_vm1, %v771_v30  ;;  %1248 = vmatprep.subr.mxu0 %v1531_v0 }
 0x207   :  { %1249 = vmatpush3.msra.mxu0 %v892_v31  ;;  %1280 = vmatprep.mubr.msk.f32.mxu0 %vm1532_vm0, %v1531_v0 }
 0x208   :  { %1250 = vmatprep.subr.mxu0 %v1531_v0 }
 0x209   :  { %1251 = vmatpush3.msra.mxu0 %v891_v32 }
 0x20a   :  { %1252 = vmatprep.subr.mxu0 %v1531_v0 }
 0x20b   :  { %1253 = vmatpush3.msra.mxu0 %v890_v33 }
 0x20c   :  { %1254 = vmatprep.subr.mxu0 %v1531_v0 }
 0x20d   :  { %1255 = vmatpush3.msra.mxu0 %v889_v34 }
 0x20e   :  { %1256 = vmatprep.subr.mxu0 %v1531_v0 }
 0x20f   :  { %1257 = vmatpush3.msra.mxu0 %v888_v35 }
 0x210   :  { %1258 = vmatprep.subr.mxu0 %v1531_v0 }
 0x211   :  { %1259 = vmatpush3.msra.mxu0 %v887_v36 }
 0x212   :  { %1260 = vmatprep.subr.mxu0 %v1531_v0 }
 0x213   :  { %1261 = vmatpush3.msra.mxu0 %v886_v37 }
 0x214   :  { %1262 = vmatprep.subr.mxu0 %v1531_v0 }
 0x215   :  { %1263 = vmatpush3.msra.mxu0 %v885_v38 }
 0x216   :  { %1264 = vmatprep.subr.mxu0 %v1531_v0 }
 0x217   :  { %1265 = vmatpush3.msra.mxu0 %v884_v39 }
 0x218   :  { %1266 = vmatprep.subr.mxu0 %v1531_v0 }
 0x219   :  { %1267 = vmatpush3.msra.mxu0 %v883_v40 }
 0x21a   :  { %1268 = vmatprep.subr.mxu0 %v1531_v0 }
 0x21b   :  { %1269 = vmatpush3.msra.mxu0 %v882_v41 }
 0x21c   :  { %1270 = vmatprep.subr.mxu0 %v1531_v0 }
 0x21d   :  { %1271 = vmatpush3.msra.mxu0 %v881_v44 }
 0x21e   :  { %1272 = vmatprep.subr.mxu0 %v1531_v0 }
 0x21f   :  { %1273 = vmatpush3.msra.mxu0 %v880_v47 }
 0x220   :  { %1274 = vmatprep.subr.mxu0 %v1531_v0 }
 0x221   :  { %1275 = vmatpush3.msra.mxu0 %v879_v50 }
 0x222   :  { %1276 = vmatprep.subr.mxu0 %v1531_v0 }
 0x223   :  { %1277 = vmatpush3.msra.mxu0 %v878_v51 }
 0x224   :  { %1278 = vmatprep.subr.mxu0 %v1531_v0 }
 0x225   :  { %1279 = vmatpush3.msra.mxu0 %v877_v52 }
 0x2be   :  { %v693_v53 = vpop.f32.mrf.mxu0 }
 0x2c0   :  { %v1233_v54 = vpop.f32.mrf.mxu0 }
 0x2c2   :  { %v767_v55 = vpop.f32.mrf.mxu0 }
 0x2c3   :  { %958 = vmatprep.mubr.f32.mxu1 %v767_v55 }
 0x2c4   :  { %959 = vmatmul.mubr.f32.vlgmr.msra.gmra.mxu1 %v693_v53  ;;  %v1240_v56 = vpop.f32.mrf.mxu0 }
 0x2c6   :  { %v841_v57 = vpop.f32.mrf.mxu0 }
 0x2c7   :  { %1281 = vmatmul.mubr.f32.vlgmr.msra.gmra.mxu0 %v841_v57 }
 0x2c8   :  { %v1247_v58 = vpop.f32.mrf.mxu0 }
 0x384   :  { %v1169_v59 = vpop.f32.mrf.mxu1 }
 0x386   :  { %v1170_v60 = vpop.f32.mrf.mxu1 }
 0x387   :  { %v1171_v62 = vadd.f32 %v1170_v60, %v1169_v59  ;;  %v1030_v63 = vpop.f32.mrf.mxu0 }
 0x389   :  { %v961_v0 = vadd.f32 %v1171_v62, %v893_v61  ;;  %v1282_v1 = vpop.f32.mrf.mxu0 }
 0x38b   :  { %v1031_v2 = vadd.f32 %v1030_v63, %v961_v0 }
 0x38d   :  { %1034 = vst [vmem:[#allocation16] sm:$0x1] %v1031_v2 }
 0x38e   :  { %1498 = shalt.err (!%p1495_p2)
}
 0x38f   :  { %1044 = dma.vmem_to_hbm [thread:$0]  %s1042_s24, 16, %s1744_s14, [#allocation4]  }
 0x390   :  { %1517 = dma.done.wait [#allocation4], 16  }
 0x391   :  { %1518 = vsyncadd [#allocation4], 4294967280 }
 0x392   :  { %1048 = vsyncpa [#allocation3], 1 }
 0x393   :  { %1049 = vsyncpa [#allocation6], 1 }
 0x394   :  { %1050 = vsyncpa [#allocation9], 1 }
 0x395   :  { %1051 = vsyncpa [#allocation12], 1 }
 0x396   :  { %1052 = vsyncpa [#allocation15], 1 }
 0x397   :  { %1053 = vsyncpa [#allocation4], 1 }

</bundles_post_ra>
